<compile_context>
chip_gen: v5e
topology: v5e:2x2
jax: 0.10.0
libtpu: 0.0.40
codegen_flags: <defaults>
</compile_context>

<pallas_src>
import jax
import jax.numpy as jnp
from jax.experimental import pallas as pl
from jax.experimental.pallas import tpu as pltpu

IN_DIM = 28 * 28    # 784
HID_DIM = 128
LATENT_DIM = 2
Z_PAD = 8           # latent padded to 8 lanes for the HBM writeback
MAX_TB = 512        # max batch-tile rows; multiple of 8 (f32 sublane)


def _round_up(x, m):
    return ((x + m - 1) // m) * m


def _ae_kernel(x_ref,
               w1_ref, b1_ref,       # encoder Linear(784 -> 128): bf16 W, f32 b
               wmid_ref, bmid_ref,   # fused [w2p | w2@w3]: (128, 256) bf16, (1, 256) f32
               w4_ref, b4_ref,       # decoder Linear(128 -> 784): bf16 W, f32 b
               recon_ref, z_ref):
    # ---- encoder layer 1 ----
    x = x_ref[...].astype(jnp.bfloat16)                               # (TB, 784)
    h1 = jnp.dot(x, w1_ref[...],
                 preferred_element_type=jnp.float32) + b1_ref[...]    # f32 (TB, 128)
    h1 = jnp.maximum(h1, 0.0)                                         # ReLU

    # ---- fused latent path: one 256-wide MXU pass ----
    # mid[:, :128]  = h1 @ w2p  + b2p   (z, cols >= LATENT_DIM are exact zeros)
    # mid[:, 128:]  = h1 @ (w2@w3) + (b2@w3 + b3)   (decoder layer-1 pre-activation)
    mid = jnp.dot(h1.astype(jnp.bfloat16), wmid_ref[...],
                  preferred_element_type=jnp.float32) + bmid_ref[...]  # (TB, 256)

    z_ref[...] = mid[:, :Z_PAD]                                       # (TB, 8) f32 store
    h2 = jnp.maximum(mid[:, HID_DIM:], 0.0)                           # ReLU, (TB, 128)

    # ---- decoder layer 2 ----
    logits = jnp.dot(h2.astype(jnp.bfloat16), w4_ref[...],
                     preferred_element_type=jnp.float32) + b4_ref[...]  # (TB, 784)
    recon_ref[...] = jax.nn.sigmoid(logits)                           # f32


def autoencoder_forward(x_nchw, params):
    """x_nchw: (B, 1, 28, 28) float32.  Returns (recon (B,1,28,28), z (B, LATENT_DIM))."""
    B = x_nchw.shape[0]
    x_flat = x_nchw.astype(jnp.float32).reshape(B, IN_DIM)            # nn.Flatten()

    # ----- batch tiling: >= 2 tiles when possible (v7x dual-TC), TB <= 512 -----
    B8 = _round_up(B, 8)
    if B8 >= 16:
        TB = min(MAX_TB, _round_up((B8 + 1) // 2, 8))
    else:
        TB = 8
    B_pad = _round_up(B8, TB)
    num_tiles = B_pad // TB
    if B_pad != B:
        x_flat = jnp.pad(x_flat, ((0, B_pad - B), (0, 0)))

    # ----- fold the two latent matmuls (done once, at f32/HIGHEST accuracy) -----
    P_HI = jax.lax.Precision.HIGHEST
    w2, b2, w3, b3 = params["w2"], params["b2"], params["w3"], params["b3"]
    w23 = jnp.dot(w2, w3, precision=P_HI)                             # (128, 128)
    b23 = jnp.dot(b2, w3, precision=P_HI) + b3                        # (1, 128)
    w2p = jnp.pad(w2, ((0, 0), (0, HID_DIM - LATENT_DIM)))            # (128, 128), zero cols
    b2p = jnp.pad(b2, ((0, 0), (0, HID_DIM - LATENT_DIM)))            # (1, 128)
    w_mid = jnp.concatenate([w2p, w23], axis=1).astype(jnp.bfloat16)  # (128, 256)
    b_mid = jnp.concatenate([b2p, b23], axis=1)                       # (1, 256) f32

    # bf16 MXU operands (explicit fast path); accumulation stays f32 in-kernel.
    w1 = params["w1"].astype(jnp.bfloat16)
    w4 = params["w4"].astype(jnp.bfloat16)
    b1, b4 = params["b1"], params["b4"]

    # ----- block specs -----
    x_spec = pl.BlockSpec((TB, IN_DIM), lambda i: (i, 0))
    recon_spec = pl.BlockSpec((TB, IN_DIM), lambda i: (i, 0))
    z_spec = pl.BlockSpec((TB, Z_PAD), lambda i: (i, 0))

    def const_spec(shape):  # fetched once, VMEM-resident across all grid steps
        return pl.BlockSpec(shape, lambda i: (0, 0))

    flops = 2 * B_pad * (IN_DIM * HID_DIM + HID_DIM * 2 * HID_DIM + HID_DIM * IN_DIM) \
            + 6 * B_pad * IN_DIM + 6 * B_pad * HID_DIM
    transcendentals = B_pad * IN_DIM  # sigmoid
    bytes_accessed = (4 * B_pad * IN_DIM * 2 + 4 * B_pad * Z_PAD
                      + 2 * (IN_DIM * HID_DIM + HID_DIM * 2 * HID_DIM + HID_DIM * IN_DIM)
                      + 4 * (HID_DIM + 2 * HID_DIM + IN_DIM))

    recon_flat, z_pad = pl.pallas_call(
        _ae_kernel,
        out_shape=(
            jax.ShapeDtypeStruct((B_pad, IN_DIM), jnp.float32),
            jax.ShapeDtypeStruct((B_pad, Z_PAD), jnp.float32),
        ),
        grid_spec=pltpu.PrefetchScalarGridSpec(
            num_scalar_prefetch=0,
            grid=(num_tiles,),
            in_specs=[
                x_spec,
                const_spec((IN_DIM, HID_DIM)),   const_spec((1, HID_DIM)),      # w1, b1
                const_spec((HID_DIM, 2 * HID_DIM)), const_spec((1, 2 * HID_DIM)),  # w_mid, b_mid
                const_spec((HID_DIM, IN_DIM)),   const_spec((1, IN_DIM)),       # w4, b4
            ],
            out_specs=(recon_spec, z_spec),
        ),
        compiler_params=pltpu.CompilerParams(
            dimension_semantics=("parallel",),       # v7x: shard batch tiles across TCs
            vmem_limit_bytes=40 * 1024 * 1024,       # fits v7x 64 MiB; < v5e/v6e 128 MiB
        ),
        cost_estimate=pl.CostEstimate(
            flops=flops,
            transcendentals=transcendentals,
            bytes_accessed=bytes_accessed,
        ),
    )(x_flat, w1, b1, w_mid, b_mid, w4, b4)

    # Strip batch padding; real latent columns; nn.Unflatten(1, (1, 28, 28)).
    recon = recon_flat[:B].reshape(B, 1, 28, 28)
    z = z_pad[:B, :LATENT_DIM]
    return recon, z


def init_params(key):
    """Deterministic synthetic init (same shapes as the torch module, stored (in, out))."""
    ks = jax.random.split(key, 8)

    def lin(kw, kb, fan_in, fan_out):
        bound = 1.0 / jnp.sqrt(fan_in)
        w = jax.random.uniform(kw, (fan_in, fan_out), jnp.float32, -bound, bound)
        b = jax.random.uniform(kb, (1, fan_out), jnp.float32, -bound, bound)
        return w, b

    w1, b1 = lin(ks[0], ks[1], IN_DIM, HID_DIM)       # Linear(784, 128)
    w2, b2 = lin(ks[2], ks[3], HID_DIM, LATENT_DIM)   # Linear(128, 2)
    w3, b3 = lin(ks[4], ks[5], LATENT_DIM, HID_DIM)   # Linear(2, 128)
    w4, b4 = lin(ks[6], ks[7], HID_DIM, IN_DIM)       # Linear(128, 784)
    return {"w1": w1, "b1": b1, "w2": w2, "b2": b2,
            "w3": w3, "b3": b3, "w4": w4, "b4": b4}


if __name__ == "__main__":
    key = jax.random.PRNGKey(0)
    k_x, k_p = jax.random.split(key)

    B = 2
    x = jax.random.uniform(k_x, (B, 1, 28, 28), jnp.float32)   # MNIST-like NCHW
    params = init_params(k_p)

    recon, z = jax.jit(autoencoder_forward)(x, params)
    jax.block_until_ready((recon, z))

    assert recon.shape == (B, 1, 28, 28) and recon.dtype == jnp.float32
    assert z.shape == (B, LATENT_DIM) and z.dtype == jnp.float32

    # Plain-JAX reference of the un-fused module math at (near-)f32 precision.
    P = jax.lax.Precision.HIGHEST
    xf = x.reshape(B, IN_DIM)
    h1 = jnp.maximum(jnp.dot(xf, params["w1"], precision=P) + params["b1"], 0.0)
    z_ref = jnp.dot(h1, params["w2"], precision=P) + params["b2"]
    h2 = jnp.maximum(jnp.dot(z_ref, params["w3"], precision=P) + params["b3"], 0.0)
    recon_ref = jax.nn.sigmoid(
        jnp.dot(h2, params["w4"], precision=P) + params["b4"]).reshape(B, 1, 28, 28)

    # Tolerance reflects the chosen fast path: bf16 MXU operands (f32 accumulate)
    # plus the W23 fold re-association give ~1e-3-grade agreement with an f32
    # reference; 5e-3 bounds that comfortably while still catching real bugs.
    assert jnp.allclose(z, z_ref, atol=5e-3, rtol=5e-3)
    assert jnp.allclose(recon, recon_ref, atol=5e-3, rtol=5e-3)

    print("KERNEL_OK")
</pallas_src>

<mosaic_0001>
module attributes {stable_mosaic.version = 11 : i64} {
  func.func @_ae_kernel(%arg0: i32, %arg1: memref<8x784xf32, #tpu.memory_space<vmem>>, %arg2: memref<784x128xbf16, #tpu.memory_space<vmem>>, %arg3: memref<1x128xf32, #tpu.memory_space<vmem>>, %arg4: memref<128x256xbf16, #tpu.memory_space<vmem>>, %arg5: memref<1x256xf32, #tpu.memory_space<vmem>>, %arg6: memref<128x784xbf16, #tpu.memory_space<vmem>>, %arg7: memref<1x784xf32, #tpu.memory_space<vmem>>, %arg8: memref<8x784xf32, #tpu.memory_space<vmem>>, %arg9: memref<8x8xf32, #tpu.memory_space<vmem>>) attributes {dimension_semantics = [#tpu.dimension_semantics<parallel>], iteration_bounds = array<i64: 1>, scalar_prefetch = 0 : i64, scratch_operands = 0 : i64, tpu.core_type = #tpu.core_type<tc>, window_params = [{transform_indices = @transform_0, window_bounds = array<i64: 8, 784>}, {pipeline_mode = #tpu.pipeline_mode<synchronous>, transform_indices = @transform_1, window_bounds = array<i64: 784, 128>}, {pipeline_mode = #tpu.pipeline_mode<synchronous>, transform_indices = @transform_2, window_bounds = array<i64: 1, 128>}, {pipeline_mode = #tpu.pipeline_mode<synchronous>, transform_indices = @transform_3, window_bounds = array<i64: 128, 256>}, {pipeline_mode = #tpu.pipeline_mode<synchronous>, transform_indices = @transform_4, window_bounds = array<i64: 1, 256>}, {pipeline_mode = #tpu.pipeline_mode<synchronous>, transform_indices = @transform_5, window_bounds = array<i64: 128, 784>}, {pipeline_mode = #tpu.pipeline_mode<synchronous>, transform_indices = @transform_6, window_bounds = array<i64: 1, 784>}, {transform_indices = @transform_7, window_bounds = array<i64: 8, 784>}, {transform_indices = @transform_8, window_bounds = array<i64: 8, 8>}]} {
    %c0 = arith.constant 0 : index
    %c0_0 = arith.constant 0 : index
    %0 = vector.load %arg1[%c0, %c0_0] : memref<8x784xf32, #tpu.memory_space<vmem>>, vector<8x784xf32>
    %1 = arith.truncf %0 : vector<8x784xf32> to vector<8x784xbf16>
    %c0_1 = arith.constant 0 : index
    %c0_2 = arith.constant 0 : index
    %2 = vector.load %arg2[%c0_1, %c0_2] : memref<784x128xbf16, #tpu.memory_space<vmem>>, vector<784x128xbf16>
    %cst = arith.constant dense<0.000000e+00> : vector<8x128xf32>
    %3 = tpu.matmul %1, %2, %cst {dimension_numbers = #tpu.dot_dimension_numbers<[1], [0], [0], [1], [0, 0, 1, 1], [], []>} : vector<8x784xbf16>, vector<784x128xbf16>, vector<8x128xf32> -> vector<8x128xf32>
    %c0_3 = arith.constant 0 : index
    %c0_4 = arith.constant 0 : index
    %4 = vector.load %arg3[%c0_3, %c0_4] : memref<1x128xf32, #tpu.memory_space<vmem>>, vector<1x128xf32>
    %5 = vector.broadcast %4 : vector<1x128xf32> to vector<8x128xf32>
    %6 = arith.addf %3, %5 : vector<8x128xf32>
    %cst_5 = arith.constant 0.000000e+00 : f32
    %7 = vector.broadcast %cst_5 : f32 to vector<8x128xf32>
    %8 = arith.maximumf %6, %7 : vector<8x128xf32>
    %9 = arith.truncf %8 : vector<8x128xf32> to vector<8x128xbf16>
    %c0_6 = arith.constant 0 : index
    %c0_7 = arith.constant 0 : index
    %10 = vector.load %arg4[%c0_6, %c0_7] : memref<128x256xbf16, #tpu.memory_space<vmem>>, vector<128x256xbf16>
    %cst_8 = arith.constant dense<0.000000e+00> : vector<8x256xf32>
    %11 = tpu.matmul %9, %10, %cst_8 {dimension_numbers = #tpu.dot_dimension_numbers<[1], [0], [0], [1], [0, 0, 1, 1], [], []>} : vector<8x128xbf16>, vector<128x256xbf16>, vector<8x256xf32> -> vector<8x256xf32>
    %c0_9 = arith.constant 0 : index
    %c0_10 = arith.constant 0 : index
    %12 = vector.load %arg5[%c0_9, %c0_10] : memref<1x256xf32, #tpu.memory_space<vmem>>, vector<1x256xf32>
    %13 = vector.broadcast %12 : vector<1x256xf32> to vector<8x256xf32>
    %14 = arith.addf %11, %13 : vector<8x256xf32>
    %15 = vector.extract_strided_slice %14 {offsets = [0, 0], sizes = [8, 8], strides = [1, 1]} : vector<8x256xf32> to vector<8x8xf32>
    %c0_11 = arith.constant 0 : index
    %c0_12 = arith.constant 0 : index
    %16 = vector.load %arg9[%c0_11, %c0_12] : memref<8x8xf32, #tpu.memory_space<vmem>>, vector<8x8xf32>
    tpu.vector_store %arg9[%c0_11, %c0_12], %15 {strides = array<i32>} : memref<8x8xf32, #tpu.memory_space<vmem>>, vector<8x8xf32>,
    %17 = vector.extract_strided_slice %14 {offsets = [0, 128], sizes = [8, 128], strides = [1, 1]} : vector<8x256xf32> to vector<8x128xf32>
    %cst_13 = arith.constant 0.000000e+00 : f32
    %18 = vector.broadcast %cst_13 : f32 to vector<8x128xf32>
    %19 = arith.maximumf %17, %18 : vector<8x128xf32>
    %20 = arith.truncf %19 : vector<8x128xf32> to vector<8x128xbf16>
    %c0_14 = arith.constant 0 : index
    %c0_15 = arith.constant 0 : index
    %21 = vector.load %arg6[%c0_14, %c0_15] : memref<128x784xbf16, #tpu.memory_space<vmem>>, vector<128x784xbf16>
    %cst_16 = arith.constant dense<0.000000e+00> : vector<8x784xf32>
    %22 = tpu.matmul %20, %21, %cst_16 {dimension_numbers = #tpu.dot_dimension_numbers<[1], [0], [0], [1], [0, 0, 1, 1], [], []>} : vector<8x128xbf16>, vector<128x784xbf16>, vector<8x784xf32> -> vector<8x784xf32>
    %c0_17 = arith.constant 0 : index
    %c0_18 = arith.constant 0 : index
    %23 = vector.load %arg7[%c0_17, %c0_18] : memref<1x784xf32, #tpu.memory_space<vmem>>, vector<1x784xf32>
    %24 = vector.broadcast %23 : vector<1x784xf32> to vector<8x784xf32>
    %25 = arith.addf %22, %24 : vector<8x784xf32>
    %26 = arith.negf %25 : vector<8x784xf32>
    %27 = math.exp %26 : vector<8x784xf32>
    %cst_19 = arith.constant 1.000000e+00 : f32
    %28 = vector.broadcast %cst_19 : f32 to vector<8x784xf32>
    %29 = arith.addf %28, %27 : vector<8x784xf32>
    %30 = arith.divf %28, %29 : vector<8x784xf32>
    %c0_20 = arith.constant 0 : index
    %c0_21 = arith.constant 0 : index
    %31 = vector.load %arg8[%c0_20, %c0_21] : memref<8x784xf32, #tpu.memory_space<vmem>>, vector<8x784xf32>
    tpu.vector_store %arg8[%c0_20, %c0_21], %30 {strides = array<i32>} : memref<8x784xf32, #tpu.memory_space<vmem>>, vector<8x784xf32>,
    return
  }
  func.func @transform_0(%arg0: i32) -> (i32, i32) {
    %c0_i32 = arith.constant 0 : i32
    %c0_i32_0 = arith.constant 0 : i32
    return %arg0, %c0_i32 : i32, i32
  }
  func.func @transform_1(%arg0: i32) -> (i32, i32) {
    %c0_i32 = arith.constant 0 : i32
    %c0_i32_0 = arith.constant 0 : i32
    %c0_i32_1 = arith.constant 0 : i32
    return %c0_i32, %c0_i32_0 : i32, i32
  }
  func.func @transform_2(%arg0: i32) -> (i32, i32) {
    %c0_i32 = arith.constant 0 : i32
    %c0_i32_0 = arith.constant 0 : i32
    %c0_i32_1 = arith.constant 0 : i32
    return %c0_i32, %c0_i32_0 : i32, i32
  }
  func.func @transform_3(%arg0: i32) -> (i32, i32) {
    %c0_i32 = arith.constant 0 : i32
    %c0_i32_0 = arith.constant 0 : i32
    %c0_i32_1 = arith.constant 0 : i32
    return %c0_i32, %c0_i32_0 : i32, i32
  }
  func.func @transform_4(%arg0: i32) -> (i32, i32) {
    %c0_i32 = arith.constant 0 : i32
    %c0_i32_0 = arith.constant 0 : i32
    %c0_i32_1 = arith.constant 0 : i32
    return %c0_i32, %c0_i32_0 : i32, i32
  }
  func.func @transform_5(%arg0: i32) -> (i32, i32) {
    %c0_i32 = arith.constant 0 : i32
    %c0_i32_0 = arith.constant 0 : i32
    %c0_i32_1 = arith.constant 0 : i32
    return %c0_i32, %c0_i32_0 : i32, i32
  }
  func.func @transform_6(%arg0: i32) -> (i32, i32) {
    %c0_i32 = arith.constant 0 : i32
    %c0_i32_0 = arith.constant 0 : i32
    %c0_i32_1 = arith.constant 0 : i32
    return %c0_i32, %c0_i32_0 : i32, i32
  }
  func.func @transform_7(%arg0: i32) -> (i32, i32) {
    %c0_i32 = arith.constant 0 : i32
    %c0_i32_0 = arith.constant 0 : i32
    return %arg0, %c0_i32 : i32, i32
  }
  func.func @transform_8(%arg0: i32) -> (i32, i32) {
    %c0_i32 = arith.constant 0 : i32
    %c0_i32_0 = arith.constant 0 : i32
    return %arg0, %c0_i32 : i32, i32
  }
}

</mosaic_0001>

<bundles_post_ra>
// kernel: autoencoder_forward.1
= control target key start
LH: loop header
LB: loop body
LE: loop exit
PB: predicated region body
PF: predicated region fallthrough
CT: control target
= control target key end

     0   :  { %vm439_vm0 = vcmask 130048   ;;  %vm664_vm1 = vcmask 64512   ;;  %s2630_s1 = inlined_call_operand.vmem [shape: bf16[784,128], index: 1, kind: input, shape index: {}]   ;;  %s2631_s2 = inlined_call_operand.vmem [shape: f32[1,128], index: 2, kind: input, shape index: {}]   ;;  %s2632_s0 = inlined_call_operand.vmem [shape: f32[8,784], index: 0, kind: input, shape index: {}]   ;;  %s2633_s3 = inlined_call_operand.vmem [shape: bf16[128,256], index: 3, kind: input, shape index: {}]   ;;  %s2634_s5 = inlined_call_operand.vmem [shape: bf16[128,784], index: 5, kind: input, shape index: {}]   ;;  %s2635_s4 = inlined_call_operand.vmem [shape: f32[1,256], index: 4, kind: input, shape index: {}]   ;;  %s2636_s8 = inlined_call_operand.vmem [shape: f32[8,8], index: 8, kind: output, shape index: {1}]   ;;  %s2637_s6 = inlined_call_operand.vmem [shape: f32[1,784], index: 6, kind: input, shape index: {}]   ;;  %s2638_s7 = inlined_call_operand.vmem [shape: f32[8,784], index: 7, kind: output, shape index: {0}]  }
   0x1   :  { %v1774_v0 = vld [vmem:[%s2630_s1 + $0x38] sm:$0xff]  ;;  %v1773_v3 = vld [vmem:[%s2630_s1 + $0x30] sm:$0xff]  ;;  %v1772_v8 = vld [vmem:[%s2630_s1 + $0x28] sm:$0xff] }
   0x2   :  { %v1782_v1 = vld [vmem:[%s2630_s1 + $0x78] sm:$0xff]  ;;  %443 = vmatpush.bf16.msra.mxu0 %v1774_v0  ;;  %v1781_v4 = vld [vmem:[%s2630_s1 + $0x70] sm:$0xff]  ;;  %v1780_v9 = vld [vmem:[%s2630_s1 + $0x68] sm:$0xff] }
   0x3   :  { %v1790_v2 = vld [vmem:[%s2630_s1 + $0xb8] sm:$0xff]  ;;  %456 = vmatpush.bf16.msra.mxu1 %v1782_v1  ;;  %v1789_v5 = vld [vmem:[%s2630_s1 + $0xb0] sm:$0xff]  ;;  %v1788_v10 = vld [vmem:[%s2630_s1 + $0xa8] sm:$0xff] }
   0x4   :  { %469 = vmatpush.bf16.msra.mxu2 %v1790_v2  ;;  %v1798_v6 = vld [vmem:[%s2630_s1 + $0xf8] sm:$0xff]  ;;  %v1797_v7 = vld [vmem:[%s2630_s1 + $0xf0] sm:$0xff]  ;;  %v1796_v11 = vld [vmem:[%s2630_s1 + $0xe8] sm:$0xff] }
   0x5   :  { %482 = vmatpush.bf16.msra.mxu3 %v1798_v6  ;;  %v1771_v12 = vld [vmem:[%s2630_s1 + $0x20] sm:$0xff]  ;;  %v1770_v16 = vld [vmem:[%s2630_s1 + $0x18] sm:$0xff]  ;;  %v1769_v20 = vld [vmem:[%s2630_s1 + $0x10] sm:$0xff] }
   0x6   :  { %444 = vmatpush.bf16.msra.mxu0 %v1773_v3  ;;  %v1779_v13 = vld [vmem:[%s2630_s1 + $0x60] sm:$0xff]  ;;  %v1778_v17 = vld [vmem:[%s2630_s1 + $0x58] sm:$0xff]  ;;  %v1777_v21 = vld [vmem:[%s2630_s1 + $0x50] sm:$0xff] }
   0x7   :  { %457 = vmatpush.bf16.msra.mxu1 %v1781_v4  ;;  %v1787_v14 = vld [vmem:[%s2630_s1 + $0xa0] sm:$0xff]  ;;  %v1786_v18 = vld [vmem:[%s2630_s1 + $0x98] sm:$0xff]  ;;  %v1785_v22 = vld [vmem:[%s2630_s1 + $0x90] sm:$0xff] }
   0x8   :  { %470 = vmatpush.bf16.msra.mxu2 %v1789_v5  ;;  %v1795_v15 = vld [vmem:[%s2630_s1 + $0xe0] sm:$0xff]  ;;  %v1794_v19 = vld [vmem:[%s2630_s1 + $0xd8] sm:$0xff]  ;;  %v1793_v23 = vld [vmem:[%s2630_s1 + $0xd0] sm:$0xff] }
   0x9   :  { %483 = vmatpush.bf16.msra.mxu3 %v1797_v7  ;;  %v1768_v24 = vld [vmem:[%s2630_s1 + $0x8] sm:$0xff]  ;;  %v1767_v27 = vld [vmem:[%s2630_s1] sm:$0xff]  ;;  %v1806_v32 = vld [vmem:[%s2630_s1 + $0x138] sm:$0xff] }
   0xa   :  { %445 = vmatpush.bf16.msra.mxu0 %v1772_v8  ;;  %v1776_v25 = vld [vmem:[%s2630_s1 + $0x48] sm:$0xff]  ;;  %v1775_v29 = vld [vmem:[%s2630_s1 + $0x40] sm:$0xff]  ;;  %v1814_v33 = vld [vmem:[%s2630_s1 + $0x178] sm:$0xff] }
   0xb   :  { %458 = vmatpush.bf16.msra.mxu1 %v1780_v9  ;;  %v1784_v26 = vld [vmem:[%s2630_s1 + $0x88] sm:$0xff]  ;;  %v29_v30 = vld [vmem:[%s2632_s0] sm:$0xff]  ;;  %v31_v35 = vld [vmem:[%s2632_s0 + $0x10] sm:$0xff] }
   0xc   :  { %471 = vmatpush.bf16.msra.mxu2 %v1788_v10  ;;  %v1792_v28 = vld [vmem:[%s2630_s1 + $0xc8] sm:$0xff]  ;;  %v1783_v34 = vld [vmem:[%s2630_s1 + $0x80] sm:$0xff]  ;;  %v36_v36 = vpack.c.bf16 %v29_v30, %v29_v30  ;;  %v32_v40 = vld [vmem:[%s2632_s0 + $0x18] sm:$0xff]  ;;  %v38_v43 = vpack.c.bf16 %v31_v35, %v31_v35 }
   0xd   :  { %484 = vmatpush.bf16.msra.mxu3 %v1796_v11  ;;  %v30_v31 = vld [vmem:[%s2632_s0 + $0x8] sm:$0xff]  ;;  %v1791_v38 = vld [vmem:[%s2630_s1 + $0xc0] sm:$0xff]  ;;  %v1805_v41 = vld [vmem:[%s2630_s1 + $0x130] sm:$0xff]  ;;  %v39_v44 = vpack.c.bf16 %v32_v40, %v32_v40 }
   0xe   :  { %446 = vmatpush.bf16.msra.mxu0 %v1771_v12  ;;  %v37_v37 = vpack.c.bf16 %v30_v31, %v30_v31  ;;  %v1815_v39 = vld [vmem:[%s2630_s1 + $0x180] sm:$0xff]  ;;  %v1813_v42 = vld [vmem:[%s2630_s1 + $0x170] sm:$0xff]  ;;  %v1804_v45 = vld [vmem:[%s2630_s1 + $0x128] sm:$0xff] }
   0xf   :  { %459 = vmatpush.bf16.msra.mxu1 %v1779_v13  ;;  %v1812_v46 = vld [vmem:[%s2630_s1 + $0x168] sm:$0xff]  ;;  %v1803_v47 = vld [vmem:[%s2630_s1 + $0x120] sm:$0xff]  ;;  %v1802_v49 = vld [vmem:[%s2630_s1 + $0x118] sm:$0xff] }
  0x10   :  { %472 = vmatpush.bf16.msra.mxu2 %v1787_v14  ;;  %v1811_v48 = vld [vmem:[%s2630_s1 + $0x160] sm:$0xff]  ;;  %v1810_v50 = vld [vmem:[%s2630_s1 + $0x158] sm:$0xff]  ;;  %v35_v51 = vld [vmem:[%s2632_s0 + $0x30] sm:$0xff] }
  0x11   :  { %485 = vmatpush.bf16.msra.mxu3 %v1795_v15  ;;  %v1801_v52 = vld [vmem:[%s2630_s1 + $0x110] sm:$0xff]  ;;  %v42_v54 = vpack.c.bf16 %v35_v51, %v35_v51  ;;  %v1800_v55 = vld [vmem:[%s2630_s1 + $0x108] sm:$0xff]  ;;  %v1799_v57 = vld [vmem:[%s2630_s1 + $0x100] sm:$0xff] }
  0x12   :  { %447 = vmatpush.bf16.msra.mxu0 %v1770_v16  ;;  %v1809_v53 = vld [vmem:[%s2630_s1 + $0x150] sm:$0xff]  ;;  %v1808_v56 = vld [vmem:[%s2630_s1 + $0x148] sm:$0xff]  ;;  %v1807_v58 = vld [vmem:[%s2630_s1 + $0x140] sm:$0xff] }
  0x13   :  { %460 = vmatpush.bf16.msra.mxu1 %v1778_v17  ;;  %v33_v59 = vld [vmem:[%s2632_s0 + $0x20] sm:$0xff]  ;;  %v34_v60 = vld [vmem:[%s2632_s0 + $0x28] sm:$0xff]  ;;  %v1530_v63 = vld [vmem:[%s2633_s3 + $0x70] sm:$0xf] }
  0x14   :  { %473 = vmatpush.bf16.msra.mxu2 %v1786_v18  ;;  %v40_v61 = vpack.c.bf16 %v33_v59, %v33_v59  ;;  %v41_v62 = vpack.c.bf16 %v34_v60, %v34_v60  ;;  %v1831_v0 = vld [vmem:[%s2633_s3 + $0x74] sm:$0xf0]  ;;  %v1830_v1 = vld [vmem:[%s2633_s3 + $0x74] sm:$0xf]  ;;  %v1532_v3 = vld [vmem:[%s2633_s3 + $0x78] sm:$0xf0] }
  0x15   :  { %486 = vmatpush.bf16.msra.mxu3 %v1794_v19  ;;  %v1531_v2 = vor.u32 %v1831_v0, %v1530_v63  ;;  %v1535_v4 = vor.u32 %v1830_v1, %v1532_v3  ;;  %v1522_v5 = vld [vmem:[%s2633_s3 + $0x60] sm:$0xf]  ;;  %v1829_v6 = vld [vmem:[%s2633_s3 + $0x64] sm:$0xf0]  ;;  %v1828_v7 = vld [vmem:[%s2633_s3 + $0x64] sm:$0xf] }
  0x16   :  { %448 = vmatpush.bf16.msra.mxu0 %v1769_v20  ;;  %v1523_v8 = vor.u32 %v1829_v6, %v1522_v5  ;;  %v1524_v9 = vld [vmem:[%s2633_s3 + $0x68] sm:$0xf0]  ;;  %v1514_v11 = vld [vmem:[%s2633_s3 + $0x50] sm:$0xf]  ;;  %v1827_v12 = vld [vmem:[%s2633_s3 + $0x54] sm:$0xf0] }
  0x17   :  { %461 = vmatpush.bf16.msra.mxu1 %v1777_v21  ;;  %v1527_v10 = vor.u32 %v1828_v7, %v1524_v9  ;;  %v1826_v13 = vld [vmem:[%s2633_s3 + $0x54] sm:$0xf]  ;;  %v1515_v14 = vor.u32 %v1827_v12, %v1514_v11  ;;  %v1516_v15 = vld [vmem:[%s2633_s3 + $0x58] sm:$0xf0]  ;;  %v1506_v17 = vld [vmem:[%s2633_s3 + $0x40] sm:$0xf] }
  0x18   :  { %474 = vmatpush.bf16.msra.mxu2 %v1785_v22  ;;  %v1519_v16 = vor.u32 %v1826_v13, %v1516_v15  ;;  %v1825_v18 = vld [vmem:[%s2633_s3 + $0x44] sm:$0xf0]  ;;  %v1824_v19 = vld [vmem:[%s2633_s3 + $0x44] sm:$0xf]  ;;  %v1508_v21 = vld [vmem:[%s2633_s3 + $0x48] sm:$0xf0] }
  0x19   :  { %487 = vmatpush.bf16.msra.mxu3 %v1793_v23  ;;  %v1507_v20 = vor.u32 %v1825_v18, %v1506_v17  ;;  %v1511_v22 = vor.u32 %v1824_v19, %v1508_v21  ;;  %v1498_v23 = vld [vmem:[%s2633_s3 + $0x30] sm:$0xf]  ;;  %v1821_v30 = vld [vmem:[%s2633_s3 + $0x24] sm:$0xf0]  ;;  %v1820_v31 = vld [vmem:[%s2633_s3 + $0x24] sm:$0xf] }
  0x1a   :  { %449 = vmatpush.bf16.msra.mxu0 %v1768_v24  ;;  %v1823_v24 = vld [vmem:[%s2633_s3 + $0x34] sm:$0xf0]  ;;  %v1482_v35 = vld [vmem:[%s2633_s3 + $0x10] sm:$0xf]  ;;  %v1734_v51 = vld [vmem:[%s2634_s5 + $0x188] sm:$0xf] }
  0x1b   :  { %462 = vmatpush.bf16.msra.mxu1 %v1776_v25  ;;  %v1822_v25 = vld [vmem:[%s2633_s3 + $0x34] sm:$0xf]  ;;  %v1885_v59 = vld [vmem:[%s2634_s5 + $0x1a8] sm:$0xf0]  ;;  %v1706_v63 = vld [vmem:[%s2634_s5 + $0x150] sm:$0xf] }
  0x1c   :  { %475 = vmatpush.bf16.msra.mxu2 %v1784_v26  ;;  %v1499_v26 = vor.u32 %v1823_v24, %v1498_v23  ;;  %v1877_v0 = vld [vmem:[%s2634_s5 + $0x168] sm:$0xf0]  ;;  %v1874_v1 = vld [vmem:[%s2634_s5 + $0x154] sm:$0xf]  ;;  %v1708_v3 = vld [vmem:[%s2634_s5 + $0x16c] sm:$0xf0] }
  0x1d   :  { %488 = vmatpush.bf16.msra.mxu3 %v1792_v28  ;;  %v1878_v5 = vld [vmem:[%s2634_s5 + $0x170] sm:$0xf0]  ;;  %v1711_v6 = vor.u32 %v1874_v1, %v1708_v3  ;;  %v1680_v11 = vld [vmem:[%s2634_s5 + $0x134] sm:$0xf0]  ;;  %v1686_v12 = vld [vmem:[%s2634_s5 + $0x120] sm:$0xf] }
  0x1e   :  { %450 = vmatpush.bf16.msra.mxu0 %v1767_v27  ;;  %v1500_v27 = vld [vmem:[%s2633_s3 + $0x38] sm:$0xf0]  ;;  %v1870_v9 = vld [vmem:[%s2634_s5 + $0x130] sm:$0xf0]  ;;  %v1652_v24 = vld [vmem:[%s2634_s5 + $0xfc] sm:$0xf0] }
  0x1f   :  { %463 = vmatpush.bf16.msra.mxu1 %v1775_v29  ;;  %v1503_v28 = vor.u32 %v1822_v25, %v1500_v27  ;;  %v1490_v29 = vld [vmem:[%s2633_s3 + $0x20] sm:$0xf]  ;;  %v1871_v13 = vld [vmem:[%s2634_s5 + $0x138] sm:$0xf0]  ;;  %v1882_v21 = vld [vmem:[%s2634_s5 + $0x194] sm:$0xf] }
  0x20   :  { %476 = vmatpush.bf16.msra.mxu2 %v1783_v34  ;;  %v1863_v17 = vld [vmem:[%s2634_s5 + $0xf8] sm:$0xf0]  ;;  %v1687_v19 = vor.u32 %v1871_v13, %v1686_v12  ;;  %v1658_v25 = vld [vmem:[%s2634_s5 + $0xe8] sm:$0xf]  ;;  %v1854_v3 = vld [vmem:[%s2634_s5 + $0xb4] sm:$0xf] }
  0x21   :  { %451 = vmatmul.bf16.vlgmr.msra.gmra.mxu0 %v36_v36  ;;  %489 = vmatpush.bf16.msra.mxu3 %v1791_v38  ;;  %v1819_v36 = vld [vmem:[%s2633_s3 + $0x14] sm:$0xf0] }
  0x22   :  { %495 = vmatpush.bf16.msrb.mxu0 %v1806_v32  ;;  %464 = vmatmul.bf16.vlgmr.msra.gmra.mxu1 %v37_v37  ;;  %v1491_v32 = vor.u32 %v1821_v30, %v1490_v29  ;;  %v1818_v37 = vld [vmem:[%s2633_s3 + $0x14] sm:$0xf]  ;;  %v1483_v38 = vor.u32 %v1819_v36, %v1482_v35  ;;  %v1875_v29 = vld [vmem:[%s2634_s5 + $0x15c] sm:$0xf] }
  0x23   :  { %508 = vmatpush.bf16.msrb.mxu1 %v1814_v33  ;;  %477 = vmatmul.bf16.vlgmr.msra.gmra.mxu2 %v38_v43  ;;  %v1492_v33 = vld [vmem:[%s2633_s3 + $0x28] sm:$0xf0]  ;;  %v1474_v43 = vld [vmem:[%s2633_s3] sm:$0xf] }
  0x24   :  { %528 = vmatpush.bf16.msrb.mxu2 %v1815_v39  ;;  %490 = vmatmul.bf16.vlgmr.msra.gmra.mxu3 %v39_v44  ;;  %v1495_v34 = vor.u32 %v1820_v31, %v1492_v33  ;;  %v1484_v39 = vld [vmem:[%s2633_s3 + $0x18] sm:$0xf0]  ;;  %v1817_v44 = vld [vmem:[%s2633_s3 + $0x4] sm:$0xf0]  ;;  %v1856_v33 = vld [vmem:[%s2634_s5 + $0xc0] sm:$0xf0] }
  0x25   :  { %638 = vmatpush.bf16.msrb.mxu3 %v1531_v2  ;;  %v1707_v2 = vor.u32 %v1877_v0, %v1706_v63 }
  0x26   :  { %496 = vmatpush.bf16.msrb.mxu0 %v1805_v41 }
  0x27   :  { %509 = vmatpush.bf16.msrb.mxu1 %v1813_v42  ;;  %v1487_v42 = vor.u32 %v1818_v37, %v1484_v39  ;;  %v1853_v37 = vld [vmem:[%s2634_s5 + $0xac] sm:$0xf]  ;;  %v1630_v39 = vld [vmem:[%s2634_s5 + $0xb0] sm:$0xf] }
  0x28   :  { %651 = vmatpush.bf16.msra.mxu2 %v1535_v4  ;;  %v1714_v4 = vld [vmem:[%s2634_s5 + $0x158] sm:$0xf] }
  0x29   :  { %639 = vmatpush.bf16.msrb.mxu3 %v1523_v8  ;;  %v1715_v7 = vor.u32 %v1878_v5, %v1714_v4  ;;  %v1678_v8 = vld [vmem:[%s2634_s5 + $0x118] sm:$0xf]  ;;  %v1632_v4 = vld [vmem:[%s2634_s5 + $0xcc] sm:$0xf0] }
  0x2a   :  { %497 = vmatpush.bf16.msrb.mxu0 %v1804_v45  ;;  %v1816_v45 = vld [vmem:[%s2633_s3 + $0x4] sm:$0xf]  ;;  %v1679_v15 = vor.u32 %v1870_v9, %v1678_v8  ;;  %v1843_v8 = vld [vmem:[%s2634_s5 + $0x58] sm:$0xf0]  ;;  %v1635_v12 = vor.u32 %v1854_v3, %v1632_v4  ;;  %v1666_v3 = vld [vmem:[%s2634_s5 + $0xf0] sm:$0xf] }
  0x2b   :  { %510 = vmatpush.bf16.msrb.mxu1 %v1812_v46  ;;  %v1475_v46 = vor.u32 %v1817_v44, %v1474_v43  ;;  %v1688_v43 = vld [vmem:[%s2634_s5 + $0x13c] sm:$0xf0]  ;;  %v1865_v4 = vld [vmem:[%s2634_s5 + $0x108] sm:$0xf0] }
  0x2c   :  { %652 = vmatpush.bf16.msra.mxu2 %v1527_v10  ;;  %v1867_v10 = vld [vmem:[%s2634_s5 + $0x11c] sm:$0xf] }
  0x2d   :  { %640 = vmatpush.bf16.msrb.mxu3 %v1515_v14  ;;  %v1683_v18 = vor.u32 %v1867_v10, %v1680_v11  ;;  %v1538_v11 = vld [vmem:[%s2634_s5] sm:$0xf] }
  0x2e   :  { %498 = vmatpush.bf16.msrb.mxu0 %v1803_v47  ;;  %v1476_v47 = vld [vmem:[%s2633_s3 + $0x8] sm:$0xf0] }
  0x2f   :  { %511 = vmatpush.bf16.msrb.mxu1 %v1811_v48  ;;  %v1479_v48 = vor.u32 %v1816_v45, %v1476_v47  ;;  %v1594_v45 = vld [vmem:[%s2634_s5 + $0x70] sm:$0xf] }
  0x30   :  { %653 = vmatpush.bf16.msra.mxu2 %v1519_v16  ;;  %v1650_v16 = vld [vmem:[%s2634_s5 + $0xe0] sm:$0xf] }
  0x31   :  { %641 = vmatpush.bf16.msrb.mxu3 %v1507_v20  ;;  %v1860_v20 = vld [vmem:[%s2634_s5 + $0xe4] sm:$0xf]  ;;  %v1651_v31 = vor.u32 %v1863_v17, %v1650_v16  ;;  %v1835_v16 = vld [vmem:[%s2634_s5 + $0x18] sm:$0xf0] }
  0x32   :  { %499 = vmatpush.bf16.msrb.mxu0 %v1802_v49  ;;  %v1655_v35 = vor.u32 %v1860_v20, %v1652_v24  ;;  %v1847_v17 = vld [vmem:[%s2634_s5 + $0x7c] sm:$0xf]  ;;  %v1832_v20 = vld [vmem:[%s2634_s5 + $0x4] sm:$0xf] }
  0x33   :  { %512 = vmatpush.bf16.msrb.mxu1 %v1810_v50  ;;  %1471 = vmatmul.msk.bf16.vlgmr.msrb.gmra.mxu2 %vm439_vm0, %v42_v54  ;;  %v1888_v54 = vld [vmem:[%s2631_s2] ss:$0 sm:$0xff]  ;;  %v1836_v24 = vld [vmem:[%s2634_s5 + $0x20] sm:$0xf0] }
  0x34   :  { %654 = vmatpush.bf16.msra.mxu2 %v1511_v22  ;;  %v1744_v22 = vld [vmem:[%s2634_s5 + $0x1ac] sm:$0xf0] }
  0x35   :  { %642 = vmatpush.bf16.msrb.mxu3 %v1499_v26  ;;  %v1864_v26 = vld [vmem:[%s2634_s5 + $0x100] sm:$0xf0]  ;;  %v1747_v27 = vor.u32 %v1882_v21, %v1744_v22  ;;  %v1540_v21 = vld [vmem:[%s2634_s5 + $0x1c] sm:$0xf0] }
  0x36   :  { %500 = vmatpush.bf16.msrb.mxu0 %v1801_v52  ;;  %v1884_v52 = vld [vmem:[%s2634_s5 + $0x1a0] sm:$0xf0]  ;;  %v1659_v36 = vor.u32 %v1864_v26, %v1658_v25  ;;  %v1750_v25 = vld [vmem:[%s2634_s5 + $0x198] sm:$0xf]  ;;  %v1539_v26 = vor.u32 %v1835_v16, %v1538_v11  ;;  %v1646_v16 = vld [vmem:[%s2634_s5 + $0xc0] sm:$0xf] }
  0x37   :  { %513 = vmatpush.bf16.msrb.mxu1 %v1809_v53  ;;  %v1881_v53 = vld [vmem:[%s2634_s5 + $0x18c] sm:$0xf]  ;;  %v1638_v11 = vld [vmem:[%s2634_s5 + $0xb8] sm:$0xf] }
  0x38   :  { %655 = vmatpush.bf16.msra.mxu2 %v1503_v28 }
  0x39   :  { %643 = vmatpush.bf16.msrb.mxu3 %v1491_v32  ;;  %v1622_v32 = vld [vmem:[%s2634_s5 + $0xa8] sm:$0xf] }
  0x3a   :  { %501 = vmatpush.bf16.msrb.mxu0 %v1800_v55  ;;  %v1623_v44 = vor.u32 %v1856_v33, %v1622_v32  ;;  %v1758_v32 = vld [vmem:[%s2634_s5 + $0x1a0] sm:$0xf]  ;;  %v1887_v33 = vld [vmem:[%s2634_s5 + $0x1b8] sm:$0xf0] }
  0x3b   :  { %514 = vmatpush.bf16.msrb.mxu1 %v1808_v56  ;;  %v1735_v56 = vor.u32 %v1884_v52, %v1734_v51  ;;  %v1846_v51 = vld [vmem:[%s2634_s5 + $0x74] sm:$0xf]  ;;  %v1861_v52 = vld [vmem:[%s2634_s5 + $0xec] sm:$0xf] }
  0x3c   :  { %656 = vmatpush.bf16.msra.mxu2 %v1495_v34  ;;  %v1716_v34 = vld [vmem:[%s2634_s5 + $0x174] sm:$0xf0] }
  0x3d   :  { %644 = vmatpush.bf16.msrb.mxu3 %v1483_v38  ;;  %v1624_v38 = vld [vmem:[%s2634_s5 + $0xc4] sm:$0xf0] }
  0x3e   :  { %502 = vmatpush.bf16.msrb.mxu0 %v1799_v57  ;;  %v1736_v57 = vld [vmem:[%s2634_s5 + $0x1a4] sm:$0xf0] }
  0x3f   :  { %515 = vmatpush.bf16.msrb.mxu1 %v1807_v58  ;;  %v1742_v58 = vld [vmem:[%s2634_s5 + $0x190] sm:$0xf] }
  0x40   :  { %657 = vmatpush.bf16.msra.mxu2 %v1487_v42  ;;  %v1868_v42 = vld [vmem:[%s2634_s5 + $0x124] sm:$0xf] }
  0x41   :  { %503 = vmatmul.bf16.vlgmr.msrb.gmra.mxu0 %v40_v61  ;;  %645 = vmatpush.bf16.msrb.mxu3 %v1475_v46  ;;  %v1739_v61 = vor.u32 %v1881_v53, %v1736_v57  ;;  %v1849_v46 = vld [vmem:[%s2634_s5 + $0x88] sm:$0xf0]  ;;  %v1691_v47 = vor.u32 %v1868_v42, %v1688_v43  ;;  %v1660_v53 = vld [vmem:[%s2634_s5 + $0x104] sm:$0xf0]  ;;  %v1850_v57 = vld [vmem:[%s2634_s5 + $0x90] sm:$0xf0]  ;;  %v1759_v42 = vor.u32 %v1887_v33, %v1758_v32 }
  0x42   :  { %516 = vmatmul.bf16.vlgmr.msrb.gmra.mxu1 %v41_v62  ;;  %v1743_v62 = vor.u32 %v1885_v59, %v1742_v58  ;;  %1036 = vmatpush.bf16.msra.mxu0 %v1735_v56  ;;  %v1602_v56 = vld [vmem:[%s2634_s5 + $0x78] sm:$0xf]  ;;  %v1595_v58 = vor.u32 %v1849_v46, %v1594_v45  ;;  %v1879_v43 = vld [vmem:[%s2634_s5 + $0x178] sm:$0xf0]  ;;  %v1724_v45 = vld [vmem:[%s2634_s5 + $0x17c] sm:$0xf0] }
  0x43   :  { %1049 = vmatpush.bf16.msra.mxu1 %v1739_v61  ;;  %v1566_v59 = vld [vmem:[%s2634_s5 + $0x38] sm:$0xf]  ;;  %v1842_v61 = vld [vmem:[%s2634_s5 + $0x50] sm:$0xf0]  ;;  %v1603_v1 = vor.u32 %v1850_v57, %v1602_v56  ;;  %v1730_v46 = vld [vmem:[%s2634_s5 + $0x168] sm:$0xf] }
  0x44   :  { %658 = vmatpush.bf16.msra.mxu2 %v1479_v48  ;;  %v1567_v10 = vor.u32 %v1842_v61, %v1566_v59  ;;  %v1869_v56 = vld [vmem:[%s2634_s5 + $0x12c] sm:$0xf]  ;;  %v1696_v57 = vld [vmem:[%s2634_s5 + $0x144] sm:$0xf0]  ;;  %v1702_v61 = vld [vmem:[%s2634_s5 + $0x130] sm:$0xf] }
  0x45   :  { %1062 = vmatpush.bf16.msra.mxu3 %v1743_v62  ;;  %v1663_v62 = vor.u32 %v1861_v52, %v1660_v53  ;;  %v1576_v52 = vld [vmem:[%s2634_s5 + $0x5c] sm:$0xf0]  ;;  %v1694_v53 = vld [vmem:[%s2634_s5 + $0x128] sm:$0xf]  ;;  %v1699_v59 = vor.u32 %v1869_v56, %v1696_v57  ;;  %v1590_v33 = vld [vmem:[%s2634_s5 + $0x50] sm:$0xf] }
  0x46   :  { %1037 = vmatpush.bf16.msra.mxu0 %v1707_v2  ;;  %v1839_v2 = vld [vmem:[%s2634_s5 + $0x3c] sm:$0xf]  ;;  %v1584_v32 = vld [vmem:[%s2634_s5 + $0x64] sm:$0xf0] }
  0x47   :  { %1050 = vmatpush.bf16.msra.mxu1 %v1711_v6 }
  0x48   :  { %1075 = vmatpush.bf16.msrb.mxu2 %v1747_v27  ;;  %v1886_v27 = vld [vmem:[%s2634_s5 + $0x1b0] sm:$0xf0] }
  0x49   :  { %1063 = vmatpush.bf16.msra.mxu3 %v1715_v7  ;;  %v1574_v7 = vld [vmem:[%s2634_s5 + $0x40] sm:$0xf] }
  0x4a   :  { %1038 = vmatpush.bf16.msra.mxu0 %v1679_v15  ;;  %v1575_v15 = vor.u32 %v1843_v8, %v1574_v7  ;;  %v1674_v7 = vld [vmem:[%s2634_s5 + $0xf8] sm:$0xf]  ;;  %v1866_v8 = vld [vmem:[%s2634_s5 + $0x110] sm:$0xf0] }
  0x4b   :  { %1051 = vmatpush.bf16.msra.mxu1 %v1683_v18  ;;  %v1604_v18 = vld [vmem:[%s2634_s5 + $0x94] sm:$0xf0] }
  0x4d   :  { %1064 = vmatpush.bf16.msra.mxu3 %v1687_v19 }
  0x4e   :  { %1039 = vmatpush.bf16.msra.mxu0 %v1651_v31 }
  0x4f   :  { %1052 = vmatpush.bf16.msra.mxu1 %v1655_v35 }
  0x51   :  { %1065 = vmatpush.bf16.msra.mxu3 %v1659_v36  ;;  %v1543_v36 = vor.u32 %v1832_v20, %v1540_v21  ;;  %v1610_v20 = vld [vmem:[%s2634_s5 + $0x80] sm:$0xf]  ;;  %v1851_v21 = vld [vmem:[%s2634_s5 + $0x98] sm:$0xf0] }
  0x52   :  { %1040 = vmatpush.bf16.msra.mxu0 %v1623_v44  ;;  %v1876_v44 = vld [vmem:[%s2634_s5 + $0x164] sm:$0xf] }
  0x56   :  { %1041 = vmatpush.bf16.msra.mxu0 %v1595_v58 }
  0x5a   :  { %1042 = vmatpush.bf16.msra.mxu0 %v1567_v10  ;;  %v1675_v10 = vor.u32 %v1866_v8, %v1674_v7 }
  0x5e   :  { %1043 = vmatpush.bf16.msra.mxu0 %v1539_v26  ;;  %v1852_v26 = vld [vmem:[%s2634_s5 + $0xa0] sm:$0xf0] }
  0x9e   :  { %v452_v40 = vpop.f32.mrf.mxu0 }
  0x9f   :  { %v2215_v41 = vpop.f32.mrf.mxu1  ;;  %v453_v14 = vadd.f32 %v1888_v54, %v452_v40  ;;  %v1719_v40 = vor.u32 %v1875_v29, %v1716_v34  ;;  %v1752_v29 = vld [vmem:[%s2634_s5 + $0x1b4] sm:$0xf0] }
  0xa1   :  { %v466_v30 = vadd.f32 %v2215_v41, %v453_v14  ;;  %v1857_v41 = vld [vmem:[%s2634_s5 + $0xc8] sm:$0xf0]  ;;  %1076 = vmatpush.bf16.msrb.mxu2 %v1719_v40 }
  0xa5   :  { %1077 = vmatpush.bf16.msrb.mxu2 %v1691_v47  ;;  %v1880_v47 = vld [vmem:[%s2634_s5 + $0x180] sm:$0xf0] }
  0xa6   :  { %v454_v49 = vpop.f32.mrf.mxu0  ;;  %v2241_v55 = vpop.f32.mrf.mxu2 }
  0xa7   :  { %v467_v50 = vpop.f32.mrf.mxu1  ;;  %v2252_v60 = vpop.f32.mrf.mxu3  ;;  %v479_v48 = vadd.f32 %v2241_v55, %v466_v30  ;;  %v1627_v49 = vor.u32 %v1853_v37, %v1624_v38  ;;  %v1596_v55 = vld [vmem:[%s2634_s5 + $0x8c] sm:$0xf0]  ;;  %v1607_v30 = vor.u32 %v1847_v17, %v1604_v18  ;;  %v1859_v17 = vld [vmem:[%s2634_s5 + $0xd8] sm:$0xf0] }
  0xa8   :  { %v1631_v50 = vor.u32 %v1857_v41, %v1630_v39  ;;  %v1599_v0 = vor.u32 %v1846_v51, %v1596_v55  ;;  %v1751_v39 = vor.u32 %v1886_v27, %v1750_v25  ;;  %v1722_v41 = vld [vmem:[%s2634_s5 + $0x160] sm:$0xf]  ;;  %v1840_v51 = vld [vmem:[%s2634_s5 + $0x44] sm:$0xf]  ;;  %v1618_v25 = vld [vmem:[%s2634_s5 + $0x88] sm:$0xf] }
  0xa9   :  { %v492_v63 = vadd.f32 %v2252_v60, %v479_v48  ;;  %1053 = vmatpush.bf16.msra.mxu1 %v1627_v49  ;;  %v1568_v60 = vld [vmem:[%s2634_s5 + $0x54] sm:$0xf0]  ;;  %1078 = vmatpush.bf16.msrb.mxu2 %v1663_v62  ;;  %v1723_v48 = vor.u32 %v1879_v43, %v1722_v41  ;;  %v1727_v49 = vor.u32 %v1876_v44, %v1724_v45  ;;  %v1872_v55 = vld [vmem:[%s2634_s5 + $0x140] sm:$0xf0]  ;;  %v1873_v62 = vld [vmem:[%s2634_s5 + $0x148] sm:$0xf0] }
  0xaa   :  { %1066 = vmatpush.bf16.msra.mxu3 %v1631_v50  ;;  %v1571_v14 = vor.u32 %v1839_v2, %v1568_v60  ;;  %1088 = vmatpush.bf16.msrb.mxu0 %v1751_v39  ;;  %v1731_v50 = vor.u32 %v1880_v47, %v1730_v46  ;;  %v1695_v58 = vor.u32 %v1872_v55, %v1694_v53  ;;  %v1668_v60 = vld [vmem:[%s2634_s5 + $0x10c] sm:$0xf0]  ;;  %v1837_v39 = vld [vmem:[%s2634_s5 + $0x28] sm:$0xf0]  ;;  %v1838_v43 = vld [vmem:[%s2634_s5 + $0x30] sm:$0xf0] }
  0xab   :  { %v1556_v41 = vld [vmem:[%s2634_s5 + $0x2c] sm:$0xf0]  ;;  %v552_v47 = vld [vmem:[%s2635_s4] sm:$0x3] }
  0xad   :  { %1054 = vmatpush.bf16.msra.mxu1 %v1599_v0  ;;  %1079 = vmatpush.bf16.msrb.mxu2 %v1635_v12  ;;  %v1833_v0 = vld [vmem:[%s2634_s5 + $0xc] sm:$0xf]  ;;  %v1858_v12 = vld [vmem:[%s2634_s5 + $0xd0] sm:$0xf0] }
  0xae   :  { %v480_v23 = vpop.f32.mrf.mxu2  ;;  %1067 = vmatpush.bf16.msra.mxu3 %v1603_v1  ;;  %1089 = vmatpush.bf16.msrb.mxu0 %v1723_v48  ;;  %v1548_v1 = vld [vmem:[%s2634_s5 + $0x24] sm:$0xf0]  ;;  %v554_v48 = vperm.slane %v552_v47, 0 }
  0xaf   :  { %v493_v28 = vpop.f32.mrf.mxu3  ;;  %v1546_v23 = vld [vmem:[%s2634_s5 + $0x8] sm:$0xf]  ;;  %v1551_v2 = vor.u32 %v1833_v0, %v1548_v1 }
  0xb0   :  { %v1883_v28 = vld [vmem:[%s2634_s5 + $0x19c] sm:$0xf]  ;;  %v1547_v37 = vor.u32 %v1836_v24, %v1546_v23  ;;  %v1611_v23 = vor.u32 %v1851_v21, %v1610_v20  ;;  %v1612_v24 = vld [vmem:[%s2634_s5 + $0x9c] sm:$0xf0] }
  0xb1   :  { %1055 = vmatpush.bf16.msra.mxu1 %v1571_v14  ;;  %v1755_v40 = vor.u32 %v1883_v28, %v1752_v29  ;;  %1080 = vmatpush.bf16.msrb.mxu2 %v1607_v30  ;;  %v1639_v14 = vor.u32 %v1858_v12, %v1638_v11  ;;  %v1619_v28 = vor.u32 %v1852_v26, %v1618_v25  ;;  %v1582_v29 = vld [vmem:[%s2634_s5 + $0x48] sm:$0xf]  ;;  %v1844_v30 = vld [vmem:[%s2634_s5 + $0x60] sm:$0xf0] }
  0xb2   :  { %1068 = vmatpush.bf16.msra.mxu3 %v1575_v15  ;;  %1090 = vmatpush.bf16.msrb.mxu0 %v1695_v58  ;;  %v1640_v15 = vld [vmem:[%s2634_s5 + $0xd4] sm:$0xf0]  ;;  %v2584_v58 = vld [vmem:[%s2637_s6] sm:$0x7f] }
  0xb5   :  { %1056 = vmatpush.bf16.msra.mxu1 %v1543_v36 }
  0xb6   :  { %v530_v54 = vpop.f32.mrf.mxu2  ;;  %1069 = vmatpush.bf16.msra.mxu3 %v1547_v37 }
  0xb9   :  { %1101 = vmatpush.bf16.msrb.mxu1 %v1755_v40  ;;  %v1834_v40 = vld [vmem:[%s2634_s5 + $0x14] sm:$0xf] }
  0xba   :  { %v1559_v45 = vor.u32 %v1834_v40, %v1556_v41 }
  0xbd   :  { %1102 = vmatpush.bf16.msrb.mxu1 %v1727_v49  ;;  %v555_v49 = vperm.slane %v552_v47, 1 }
  0xbe   :  { %v504_v5 = vpop.f32.mrf.mxu0  ;;  %v532_v19 = vpop.f32.mrf.mxu2 }
  0xbf   :  { %v517_v6 = vpop.f32.mrf.mxu1  ;;  %v505_v9 = vadd.f32 %v504_v5, %v492_v63  ;;  %v1703_v63 = vor.u32 %v1873_v62, %v1702_v61  ;;  %v1862_v5 = vld [vmem:[%s2634_s5 + $0xf4] sm:$0xf]  ;;  %v1647_v19 = vor.u32 %v1859_v17, %v1646_v16  ;;  %v735_v61 = vperm.slane %v2584_v58, 1 }
  0xc0   :  { %v738_v17 = vperm.slane %v2584_v58, 4 }
  0xc1   :  { %v518_v13 = vadd.f32 %v517_v6, %v505_v9  ;;  %1103 = vmatpush.bf16.msrb.mxu1 %v1699_v59  ;;  %v1667_v6 = vor.u32 %v1865_v4, %v1666_v3  ;;  %v1671_v9 = vor.u32 %v1862_v5, %v1668_v60  ;;  %v734_v59 = vperm.slane %v2584_v58, 0 }
  0xc2   :  { %v736_v4 = vperm.slane %v2584_v58, 2  ;;  %v737_v5 = vperm.slane %v2584_v58, 3 }
  0xc3   :  { %v531_v22 = vadd.f32 %v530_v54, %v518_v13  ;;  %v1579_v54 = vor.u32 %v1840_v51, %v1576_v52  ;;  %1091 = vmatpush.bf16.msrb.mxu0 %v1667_v6  ;;  %v1855_v13 = vld [vmem:[%s2634_s5 + $0xbc] sm:$0xf] }
  0xc4   :  { %v1643_v18 = vor.u32 %v1855_v13, %v1640_v15 }
  0xc5   :  { %v534_v31 = vmax.f32 %v531_v22, 0.0  ;;  %1081 = vmatpush.bf16.msrb.mxu2 %v1579_v54  ;;  %1104 = vmatpush.bf16.msrb.mxu1 %v1671_v9  ;;  %v1848_v22 = vld [vmem:[%s2634_s5 + $0x84] sm:$0xf] }
  0xc6   :  { %v506_v34 = vpop.f32.mrf.mxu0  ;;  %v1615_v27 = vor.u32 %v1848_v22, %v1612_v24 }
  0xc7   :  { %v519_v35 = vpop.f32.mrf.mxu1  ;;  %v535_v38 = vpack.c.bf16 %v534_v31, %v534_v31  ;;  %1092 = vmatpush.bf16.msrb.mxu0 %v1639_v14  ;;  %v1841_v31 = vld [vmem:[%s2634_s5 + $0x4c] sm:$0xf] }
  0xc8   :  { %v1845_v34 = vld [vmem:[%s2634_s5 + $0x68] sm:$0xf0]  ;;  %v1583_v35 = vor.u32 %v1844_v30, %v1582_v29  ;;  %v1587_v36 = vor.u32 %v1841_v31, %v1584_v32 }
  0xc9   :  { %646 = vmatmul.bf16.vlgmr.msrb.gmra.mxu3 %v535_v38  ;;  %659 = vmatmul.bf16.vlgmr.msra.gmra.mxu2 %v535_v38  ;;  %v1591_v37 = vor.u32 %v1845_v34, %v1590_v33  ;;  %v1554_v38 = vld [vmem:[%s2634_s5 + $0x10] sm:$0xf]  ;;  %v740_v33 = vperm.slane %v2584_v58, 6 }
  0xca   :  { %1114 = vmatpush.bf16.msrb.mxu3 %v1759_v42  ;;  %1082 = vmatpush.bf16.msrb.mxu2 %v1551_v2  ;;  %v1562_v42 = vld [vmem:[%s2634_s5 + $0x18] sm:$0xf]  ;;  %v1555_v44 = vor.u32 %v1837_v39, %v1554_v38 }
  0xcb   :  { %1105 = vmatpush.bf16.msrb.mxu1 %v1643_v18  ;;  %1093 = vmatpush.bf16.msrb.mxu0 %v1611_v23  ;;  %v1563_v46 = vor.u32 %v1838_v43, %v1562_v42  ;;  %v739_v18 = vperm.slane %v2584_v58, 5 }
  0xce   :  { %1115 = vmatpush.bf16.msrb.mxu3 %v1731_v50 }
  0xcf   :  { %1106 = vmatpush.bf16.msrb.mxu1 %v1615_v27  ;;  %1094 = vmatpush.bf16.msrb.mxu0 %v1583_v35 }
  0xd2   :  { %1116 = vmatpush.bf16.msrb.mxu3 %v1703_v63 }
  0xd3   :  { %1107 = vmatpush.bf16.msrb.mxu1 %v1587_v36  ;;  %1095 = vmatpush.bf16.msrb.mxu0 %v1555_v44 }
  0xd6   :  { %1117 = vmatpush.bf16.msrb.mxu3 %v1675_v10 }
  0xd7   :  { %1108 = vmatpush.bf16.msrb.mxu1 %v1559_v45 }
  0xda   :  { %1118 = vmatpush.bf16.msrb.mxu3 %v1647_v19 }
  0xde   :  { %1119 = vmatpush.bf16.msrb.mxu3 %v1619_v28 }
  0xe2   :  { %1120 = vmatpush.bf16.msrb.mxu3 %v1591_v37 }
  0xe6   :  { %1121 = vmatpush.bf16.msrb.mxu3 %v1563_v46 }
 0x14c   :  { %v647_v50 = vpop.f32.mrf.mxu3  ;;  %v660_v51 = vpop.f32.mrf.mxu2 }
 0x14d   :  { %v648_v52 = vadd.f32 %v647_v50, %v554_v48  ;;  %v661_v53 = vadd.f32 %v660_v51, %v555_v49 }
 0x14f   :  { %665 = vst.msk [vmem:[%s2636_s8] sm:$0xff] %vm664_vm1, %v648_v52  ;;  %v666_v54 = vmax.f32 %v661_v53, 0.0 }
 0x151   :  { %v667_v55 = vpack.c.bf16 %v666_v54, %v666_v54 }
 0x153   :  { %1044 = vmatmul.bf16.vlgmr.msra.gmra.mxu0 %v667_v55  ;;  %1057 = vmatmul.bf16.vlgmr.msra.gmra.mxu1 %v667_v55 }
 0x154   :  { %1070 = vmatmul.bf16.vlgmr.msra.gmra.mxu3 %v667_v55  ;;  %1083 = vmatmul.bf16.vlgmr.msrb.gmra.mxu2 %v667_v55  ;;  %v649_v56 = vpop.f32.mrf.mxu3  ;;  %v662_v57 = vpop.f32.mrf.mxu2 }
 0x163   :  { %1096 = vmatmul.bf16.vlgmr.msrb.gmra.mxu0 %v667_v55  ;;  %1109 = vmatmul.bf16.vlgmr.msrb.gmra.mxu1 %v667_v55 }
 0x164   :  { %1122 = vmatmul.bf16.vlgmr.msrb.gmra.mxu3 %v667_v55 }
 0x1d0   :  { %v1045_v62 = vpop.f32.mrf.mxu0  ;;  %v1058_v63 = vpop.f32.mrf.mxu1 }
 0x1d1   :  { %v1046_v0 = vadd.f32 %v1045_v62, %v734_v59  ;;  %v1059_v1 = vadd.f32 %v1058_v63, %v735_v61 }
 0x1d3   :  { %v1760_v2 = vmul.f32 -1.442695, %v1046_v0  ;;  %v1761_v3 = vmul.f32 -1.442695, %v1059_v1 }
 0x1d5   :  { %1889 = vpow2.f32 %v1760_v2 }
 0x1d6   :  { %1891 = vpow2.f32 %v1761_v3 }
 0x1d7   :  { %v1071_v6 = vpop.f32.mrf.mxu3  ;;  %v1084_v60 = vpop.f32.mrf.mxu2 }
 0x1d8   :  { %v1072_v7 = vadd.f32 %v1071_v6, %v736_v4  ;;  %v1085_v8 = vadd.f32 %v1084_v60, %v737_v5  ;;  %v1047_v9 = vpop.f32.mrf.mxu0  ;;  %v1060_v10 = vpop.f32.mrf.mxu1 }
 0x1da   :  { %v1762_v11 = vmul.f32 -1.442695, %v1072_v7  ;;  %v1763_v12 = vmul.f32 -1.442695, %v1085_v8 }
 0x1db   :  { %v1890_v13 = vpop.eup %1889 }
 0x1dc   :  { %v1892_v14 = vpop.eup %1891  ;;  %v1148_v15 = vadd.f32 1.0, %v1890_v13  ;;  %1893 = vpow2.f32 %v1762_v11 }
 0x1dd   :  { %v1149_v16 = vadd.f32 1.0, %v1892_v14  ;;  %1895 = vpow2.f32 %v1763_v12 }
 0x1de   :  { %1897 = vrcp.f32 %v1148_v15  ;;  %v1164_v37 = vand.u32 2147483647, %v1148_v15  ;;  %v1166_v39 = vand.u32 2147483648, %v1148_v15  ;;  %vm1160_vm4 = vweird.f32 %v1148_v15 }
 0x1df   :  { %1899 = vrcp.f32 %v1149_v16  ;;  %v1073_v19 = vpop.f32.mrf.mxu3  ;;  %v1086_v20 = vpop.f32.mrf.mxu2  ;;  %v1179_v41 = vand.u32 2147483647, %v1149_v16  ;;  %v1181_v42 = vand.u32 2147483648, %v1149_v16  ;;  %vm1175_vm5 = vweird.f32 %v1149_v16 }
 0x1e0   :  { %v1097_v21 = vpop.f32.mrf.mxu0  ;;  %v1110_v22 = vpop.f32.mrf.mxu1  ;;  %vm1165_vm7 = vcmp.eq.f32.partialorder %v1164_v37, 8.507059e+37  ;;  %v1167_v51 = vor.u32 1.1754944e-38, %v1166_v39 }
 0x1e1   :  { %v1098_v23 = vadd.f32 %v1097_v21, %v738_v17  ;;  %v1111_v25 = vadd.f32 %v1110_v22, %v739_v18  ;;  %vm1180_vm9 = vcmp.eq.f32.partialorder %v1179_v41, 8.507059e+37  ;;  %v1182_v56 = vor.u32 1.1754944e-38, %v1181_v42 }
 0x1e2   :  { %v1894_v24 = vpop.eup %1893 }
 0x1e3   :  { %v1896_v26 = vpop.eup %1895  ;;  %v2592_v27 = vadd.f32 1.0, %v1894_v24  ;;  %v1764_v32 = vmul.f32 -1.442695, %v1098_v23  ;;  %v1765_v35 = vmul.f32 -1.442695, %v1111_v25 }
 0x1e4   :  { %v1898_v28 = vpop.eup %1897  ;;  %v2594_v29 = vadd.f32 1.0, %v1896_v26 }
 0x1e5   :  { %v1900_v30 = vpop.eup %1899  ;;  %v1156_v31 = vmul.f32 %v1898_v28, %v1148_v15  ;;  %1901 = vrcp.f32 %v2592_v27  ;;  %vm1161_vm2 = vweird.f32 %v1898_v28  ;;  %v1194_v0 = vand.u32 2147483647, %v2592_v27 }
 0x1e6   :  { %v1171_v34 = vmul.f32 %v1900_v30, %v1149_v16  ;;  %1903 = vrcp.f32 %v2594_v29  ;;  %vm1176_vm3 = vweird.f32 %v1900_v30  ;;  %vm1162_vm6 = vmor %vm1160_vm4, %vm1161_vm2  ;;  %v1196_v1 = vand.u32 2147483648, %v2592_v27 }
 0x1e7   :  { %v1157_v36 = vsub.f32 1.0, %v1156_v31  ;;  %v1123_v38 = vpop.f32.mrf.mxu3  ;;  %1905 = vpow2.f32 %v1764_v32  ;;  %vm1177_vm8 = vmor %vm1175_vm5, %vm1176_vm3  ;;  %vm1190_vm11 = vweird.f32 %v2592_v27  ;;  %v1209_v60 = vand.u32 2147483647, %v2594_v29 }
 0x1e8   :  { %v1172_v40 = vsub.f32 1.0, %v1171_v34  ;;  %v1099_v43 = vpop.f32.mrf.mxu0  ;;  %v1112_v44 = vpop.f32.mrf.mxu1  ;;  %v1124_v46 = vadd.f32 %v1123_v38, %v740_v33  ;;  %1907 = vpow2.f32 %v1765_v35  ;;  %v1211_v7 = vand.u32 2147483648, %v2594_v29 }
 0x1e9   :  { %v1158_v45 = vmul.f32 %v1898_v28, %v1157_v36  ;;  %v1197_v12 = vor.u32 1.1754944e-38, %v1196_v1  ;;  %vm1195_vm14 = vcmp.eq.f32.partialorder %v1194_v0, 8.507059e+37  ;;  %vm1205_vm15 = vweird.f32 %v2594_v29 }
 0x1ea   :  { %v1173_v47 = vmul.f32 %v1900_v30, %v1172_v40  ;;  %v1766_v50 = vmul.f32 -1.442695, %v1124_v46  ;;  %v1212_v16 = vor.u32 1.1754944e-38, %v1211_v7  ;;  %vm1210_vm2 = vcmp.eq.f32.partialorder %v1209_v60, 8.507059e+37 }
 0x1eb   :  { %v1902_v48 = vpop.eup %1901  ;;  %v1159_v49 = vadd.f32 %v1898_v28, %v1158_v45 }
 0x1ec   :  { %v1174_v52 = vadd.f32 %v1900_v30, %v1173_v47  ;;  %v1186_v53 = vmul.f32 %v1902_v48, %v2592_v27  ;;  %v1904_v54 = vpop.eup %1903  ;;  %1909 = vpow2.f32 %v1766_v50  ;;  %vm1191_vm10 = vweird.f32 %v1902_v48 }
 0x1ed   :  { %v1163_v55 = vsel %vm1162_vm6, %v1898_v28, %v1159_v49  ;;  %v1201_v61 = vmul.f32 %v1904_v54, %v2594_v29  ;;  %v1906_v62 = vpop.eup %1905  ;;  %vm1206_vm12 = vweird.f32 %v1904_v54  ;;  %vm1192_vm13 = vmor %vm1190_vm11, %vm1191_vm10 }
 0x1ee   :  { %v1168_v57 = vsel %vm1165_vm7, %v1167_v51, %v1163_v55  ;;  %v1178_v58 = vsel %vm1177_vm8, %v1900_v30, %v1174_v52  ;;  %v1187_v59 = vsub.f32 1.0, %v1186_v53  ;;  %v1908_v3 = vpop.eup %1907  ;;  %v1152_v6 = vadd.f32 1.0, %v1906_v62  ;;  %vm1207_vm1 = vmor %vm1205_vm15, %vm1206_vm12 }
 0x1ef   :  { %1260 = vst [vmem:[%s2638_s7] sm:$0xff] %v1168_v57  ;;  %v1183_v63 = vsel %vm1180_vm9, %v1182_v56, %v1178_v58  ;;  %v1125_v2 = vpop.f32.mrf.mxu3  ;;  %v1202_v5 = vsub.f32 1.0, %v1201_v61  ;;  %v1153_v8 = vadd.f32 1.0, %v1908_v3 }
 0x1f0   :  { %1261 = vst [vmem:[%s2638_s7 + $0x8] sm:$0xff] %v1183_v63  ;;  %v1188_v4 = vmul.f32 %v1902_v48, %v1187_v59  ;;  %1911 = vrcp.f32 %v1152_v6  ;;  %v1224_v25 = vand.u32 2147483647, %v1152_v6  ;;  %v1226_v26 = vand.u32 2147483648, %v1152_v6 }
 0x1f1   :  { %v1203_v10 = vmul.f32 %v1904_v54, %v1202_v5  ;;  %1913 = vrcp.f32 %v1153_v8  ;;  %v1239_v28 = vand.u32 2147483647, %v1153_v8  ;;  %v1241_v31 = vand.u32 2147483648, %v1153_v8 }
 0x1f2   :  { %v1189_v9 = vadd.f32 %v1902_v48, %v1188_v4  ;;  %v1910_v11 = vpop.eup %1909  ;;  %vm1220_vm5 = vweird.f32 %v1152_v6  ;;  %vm1225_vm6 = vcmp.eq.f32.partialorder %v1224_v25, 8.507059e+37  ;;  %vm1235_vm7 = vweird.f32 %v1153_v8 }
 0x1f3   :  { %v1204_v14 = vadd.f32 %v1904_v54, %v1203_v10  ;;  %v1154_v17 = vadd.f32 1.0, %v1910_v11  ;;  %v1227_v35 = vor.u32 1.1754944e-38, %v1226_v26  ;;  %vm1240_vm9 = vcmp.eq.f32.partialorder %v1239_v28, 8.507059e+37 }
 0x1f4   :  { %v1193_v13 = vsel %vm1192_vm13, %v1902_v48, %v1189_v9  ;;  %v1242_v39 = vor.u32 1.1754944e-38, %v1241_v31 }
 0x1f5   :  { %v1198_v15 = vsel %vm1195_vm14, %v1197_v12, %v1193_v13  ;;  %v1208_v18 = vsel %vm1207_vm1, %v1904_v54, %v1204_v14  ;;  %1915 = vrcp.f32 %v1154_v17  ;;  %v1254_v40 = vand.u32 2147483647, %v1154_v17 }
 0x1f6   :  { %1262 = vst [vmem:[%s2638_s7 + $0x10] sm:$0xff] %v1198_v15  ;;  %v1213_v19 = vsel %vm1210_vm2, %v1212_v16, %v1208_v18  ;;  %v1912_v20 = vpop.eup %1911  ;;  %v1256_v41 = vand.u32 2147483648, %v1154_v17  ;;  %vm1250_vm12 = vweird.f32 %v1154_v17 }
 0x1f7   :  { %1263 = vst [vmem:[%s2638_s7 + $0x18] sm:$0xff] %v1213_v19  ;;  %v1914_v21 = vpop.eup %1913  ;;  %v1216_v22 = vmul.f32 %v1912_v20, %v1152_v6  ;;  %vm1221_vm3 = vweird.f32 %v1912_v20  ;;  %vm1255_vm14 = vcmp.eq.f32.partialorder %v1254_v40, 8.507059e+37 }
 0x1f8   :  { %v1231_v23 = vmul.f32 %v1914_v21, %v1153_v8  ;;  %vm1236_vm4 = vweird.f32 %v1914_v21  ;;  %vm1222_vm8 = vmor %vm1220_vm5, %vm1221_vm3  ;;  %v1257_v47 = vor.u32 1.1754944e-38, %v1256_v41 }
 0x1f9   :  { %v1217_v24 = vsub.f32 1.0, %v1216_v22  ;;  %vm1237_vm10 = vmor %vm1235_vm7, %vm1236_vm4 }
 0x1fa   :  { %v1232_v27 = vsub.f32 1.0, %v1231_v23 }
 0x1fb   :  { %v1916_v29 = vpop.eup %1915  ;;  %v1218_v30 = vmul.f32 %v1912_v20, %v1217_v24 }
 0x1fc   :  { %v1233_v32 = vmul.f32 %v1914_v21, %v1232_v27  ;;  %v1246_v33 = vmul.f32 %v1916_v29, %v1154_v17  ;;  %vm1251_vm11 = vweird.f32 %v1916_v29 }
 0x1fd   :  { %v1219_v34 = vadd.f32 %v1912_v20, %v1218_v30  ;;  %vm1252_vm13 = vmor %vm1250_vm12, %vm1251_vm11 }
 0x1fe   :  { %v1234_v36 = vadd.f32 %v1914_v21, %v1233_v32  ;;  %v1247_v37 = vsub.f32 1.0, %v1246_v33 }
 0x1ff   :  { %v1223_v38 = vsel %vm1222_vm8, %v1912_v20, %v1219_v34 }
 0x200   :  { %v1228_v42 = vsel %vm1225_vm6, %v1227_v35, %v1223_v38  ;;  %v1238_v43 = vsel %vm1237_vm10, %v1914_v21, %v1234_v36  ;;  %v1248_v44 = vmul.f32 %v1916_v29, %v1247_v37 }
 0x201   :  { %1264 = vst [vmem:[%s2638_s7 + $0x20] sm:$0xff] %v1228_v42  ;;  %v1243_v45 = vsel %vm1240_vm9, %v1242_v39, %v1238_v43 }
 0x202   :  { %1265 = vst [vmem:[%s2638_s7 + $0x28] sm:$0xff] %v1243_v45  ;;  %v1249_v46 = vadd.f32 %v1916_v29, %v1248_v44 }
 0x204   :  { %v1253_v48 = vsel %vm1252_vm13, %v1916_v29, %v1249_v46 }
 0x205   :  { %v1258_v49 = vsel %vm1255_vm14, %v1257_v47, %v1253_v48 }
 0x206   :  { %1266 = vst.msk [vmem:[%s2638_s7 + $0x30] sm:$0xff] %vm439_vm0, %v1258_v49 }

</bundles_post_ra>
